<compile_context>
chip_gen: v7x
topology: tpu7x:2x2x1
jax: 0.10.0
libtpu: 0.0.40
codegen_flags: <defaults>
</compile_context>

<pallas_src>
import jax
import jax.numpy as jnp
from jax.experimental import pallas as pl
from jax.experimental.pallas import tpu as pltpu


def _round_up(a, b):
    return ((a + b - 1) // b) * b


def _vmem_budget_bytes():
    """Per-generation VMEM budget (used both for tile sizing and vmem_limit_bytes)."""
    cap = 64 * 1024 * 1024  # conservative fallback (v7x per-TC physical VMEM)
    try:
        info = pltpu.get_tpu_info()
        cap = int(getattr(info, "vmem_capacity_bytes", cap))
    except Exception:
        pass
    # ~75% of physical, capped: 128 MiB (v5e/v6e) -> 96 MiB, 64 MiB (v7x) -> 48 MiB.
    return min(cap * 3 // 4, 96 * 1024 * 1024)


def _make_kernel(act):
    def kernel(x_ref, w_ref, shift_ref, o_ref):
        # w_ref: (tn, Cin), x_ref: (Cin, tl), shift_ref: (tn, 1), o_ref: (tn, tl)
        y = jnp.dot(w_ref[...], x_ref[...], preferred_element_type=jnp.float32)
        y = y + shift_ref[...]          # folded conv-bias + BatchNorm (eval)
        if act:
            y = jnp.maximum(y, 0.0)     # ReLU
        o_ref[...] = y.astype(o_ref.dtype)
    return kernel


def conv_bn_act(x_nchw, w, b, gamma, beta, running_mean, running_var,
                eps=1e-5, act=True, compute_dtype=jnp.bfloat16, out_dtype=None,
                max_tl=8192, max_tn=256):
    """1x1 Conv2d + BatchNorm2d (eval) + optional ReLU, computed in NCHW.

    x_nchw: (N, Cin, H, W)
    w:      (Cout, Cin)    (1x1 conv weight, squeezed)
    b:      (Cout,)
    compute_dtype: matmul / HBM dtype for x and the folded weight (accumulation
        is always f32).  Default bf16 halves activation read bytes when x is
        already bf16; pass None (or jnp.float32) for full-precision compute.
    out_dtype: output dtype (default: same as x).
    """
    N, Cin, H, W = x_nchw.shape
    Cout = w.shape[0]
    HW = H * W
    out_dtype = x_nchw.dtype if out_dtype is None else out_dtype
    compute_dtype = x_nchw.dtype if compute_dtype is None else compute_dtype

    # --- fold conv bias + BN(eval) into weights and a per-channel shift (f32) --
    inv_std = jax.lax.rsqrt(running_var.astype(jnp.float32) + eps)
    scale = gamma.astype(jnp.float32) * inv_std                   # (Cout,)
    w_f = w.astype(jnp.float32) * scale[:, None]                  # W' = scale * W
    shift = (b.astype(jnp.float32) - running_mean.astype(jnp.float32)) * scale \
        + beta.astype(jnp.float32)                                # (Cout,)

    x3 = x_nchw.reshape(N, Cin, HW).astype(compute_dtype)         # view + (opt) cast
    w_f = w_f.astype(compute_dtype)
    shift2 = shift.reshape(Cout, 1)                               # stays f32

    in_bytes = jnp.dtype(compute_dtype).itemsize
    out_bytes = jnp.dtype(out_dtype).itemsize

    # --- tiling, derived from the VMEM budget --------------------------------
    tn = Cout if Cout <= max_tn else max_tn
    cout_tiles = pl.cdiv(Cout, tn)

    budget = _vmem_budget_bytes()
    tile_budget = int(budget * 0.9)                       # headroom for internal scratch
    # Double-buffered per-step bytes: x(Cin,tl) + w(tn,Cin) + out(tn,tl) + shift(tn,1).
    fixed = 2 * tn * Cin * in_bytes + 2 * tn * 4
    per_lane = 2 * Cin * in_bytes + 2 * tn * out_bytes
    tl_fit = max((tile_budget - fixed) // per_lane, 128)
    tl_cap = max(128, min(max_tl, (tl_fit // 128) * 128))

    if HW <= 128:
        tl = HW                                           # single full-extent block
    else:
        # Even-split rounding minimizes boundary-tile waste; keep >= 2 spatial
        # tiles when the other parallel axes are trivial (v7x has 2 TCs).
        min_hw_tiles = 2 if (N == 1 and cout_tiles == 1) else 1
        num_hw_tiles = max(pl.cdiv(HW, tl_cap), min_hw_tiles)
        tl = min(_round_up(pl.cdiv(HW, num_hw_tiles), 128), tl_cap)
    hw_tiles = pl.cdiv(HW, tl)

    grid = (N, hw_tiles, cout_tiles)   # Cout innermost -> x tile reused across it

    out3 = pl.pallas_call(
        _make_kernel(act),
        out_shape=jax.ShapeDtypeStruct((N, Cout, HW), out_dtype),
        grid_spec=pltpu.PrefetchScalarGridSpec(
            num_scalar_prefetch=0,
            grid=grid,
            in_specs=[
                # x index is independent of the innermost Cout-tile axis, so the
                # pipeline skips re-DMA of the activation tile across Cout tiles.
                pl.BlockSpec((None, Cin, tl), lambda n, j, c: (n, 0, j)),
                pl.BlockSpec((tn, Cin), lambda n, j, c: (c, 0)),
                pl.BlockSpec((tn, 1), lambda n, j, c: (c, 0)),
            ],
            out_specs=pl.BlockSpec((None, tn, tl), lambda n, j, c: (n, c, j)),
        ),
        compiler_params=pltpu.CompilerParams(
            dimension_semantics=("parallel", "parallel", "parallel"),
            vmem_limit_bytes=int(budget)),
    )(x3, w_f, shift2)

    return out3.reshape(N, Cout, H, W)


def _reference(x_nchw, w, b, gamma, beta, running_mean, running_var,
               eps=1e-5, act=True):
    # Pure-JAX reference of the same forward pass (NCHW).
    N, Cin, H, W = x_nchw.shape
    Cout = w.shape[0]
    x2d = jnp.transpose(x_nchw, (0, 2, 3, 1)).reshape(-1, Cin)
    y = x2d @ w.T + b
    y = (y - running_mean) / jnp.sqrt(running_var + eps) * gamma + beta
    if act:
        y = jnp.maximum(y, 0.0)
    return y.reshape(N, H, W, Cout).transpose(0, 3, 1, 2)


if __name__ == "__main__":
    key = jax.random.PRNGKey(0)
    k1, k2, k3, k4, k5, k6, k7 = jax.random.split(key, 7)

    N, Cin, H, W = 2, 4, 16, 16
    Cout = 8

    x = jax.random.normal(k1, (N, Cin, H, W), dtype=jnp.float32)
    # Conv2d(Cin, Cout, kernel_size=1, bias=True) parameters.
    w = jax.random.normal(k2, (Cout, Cin), dtype=jnp.float32) * 0.1
    b = jax.random.normal(k3, (Cout,), dtype=jnp.float32) * 0.1
    # BatchNorm2d(Cout) parameters (deterministic, non-trivial).
    gamma = 1.0 + 0.1 * jax.random.normal(k4, (Cout,), dtype=jnp.float32)
    beta = 0.1 * jax.random.normal(k5, (Cout,), dtype=jnp.float32)
    running_mean = 0.05 * jax.random.normal(k6, (Cout,), dtype=jnp.float32)
    running_var = jnp.abs(1.0 + 0.1 * jax.random.normal(k7, (Cout,),
                                                        dtype=jnp.float32))

    ref = _reference(x, w, b, gamma, beta, running_mean, running_var)

    # Default path: bf16 compute (f32 accumulation), f32 output.
    out = conv_bn_act(x, w, b, gamma, beta, running_mean, running_var)
    out = jax.block_until_ready(out)
    assert out.shape == (N, Cout, H, W)
    assert jnp.allclose(out, ref, atol=5e-2, rtol=5e-2), "bf16 path mismatch"

    # Full-f32 path: tight tolerance.
    out32 = conv_bn_act(x, w, b, gamma, beta, running_mean, running_var,
                        compute_dtype=jnp.float32)
    out32 = jax.block_until_ready(out32)
    assert jnp.allclose(out32, ref, atol=1e-5, rtol=1e-5), "f32 path mismatch"

    # Awkward shapes: exercises Pallas partial boundary blocks (no wrapper
    # pad/slice), act=False, and the >=2-spatial-tile rule for N==1.
    N2, Cin2, H2, W2, Cout2 = 1, 6, 15, 15, 10
    x2 = jax.random.normal(k1, (N2, Cin2, H2, W2), dtype=jnp.float32)
    w2 = jax.random.normal(k2, (Cout2, Cin2), dtype=jnp.float32) * 0.1
    b2 = jax.random.normal(k3, (Cout2,), dtype=jnp.float32) * 0.1
    g2 = 1.0 + 0.1 * jax.random.normal(k4, (Cout2,), dtype=jnp.float32)
    be2 = 0.1 * jax.random.normal(k5, (Cout2,), dtype=jnp.float32)
    rm2 = 0.05 * jax.random.normal(k6, (Cout2,), dtype=jnp.float32)
    rv2 = jnp.abs(1.0 + 0.1 * jax.random.normal(k7, (Cout2,), dtype=jnp.float32))
    ref2 = _reference(x2, w2, b2, g2, be2, rm2, rv2, act=False)
    out2 = conv_bn_act(x2, w2, b2, g2, be2, rm2, rv2, act=False,
                       compute_dtype=jnp.float32)
    out2 = jax.block_until_ready(out2)
    assert out2.shape == (N2, Cout2, H2, W2)
    assert jnp.allclose(out2, ref2, atol=1e-5, rtol=1e-5), "ragged path mismatch"

    print("KERNEL_OK")
</pallas_src>

<mosaic_0001>
module attributes {stable_mosaic.version = 11 : i64} {
  func.func @kernel(%arg0: i32, %arg1: i32, %arg2: i32, %arg3: memref<1x4x256xbf16, #tpu.memory_space<vmem>>, %arg4: memref<8x4xbf16, #tpu.memory_space<vmem>>, %arg5: memref<8x1xf32, #tpu.memory_space<vmem>>, %arg6: memref<1x8x256xf32, #tpu.memory_space<vmem>>) attributes {dimension_semantics = [#tpu.dimension_semantics<parallel>, #tpu.dimension_semantics<parallel>, #tpu.dimension_semantics<parallel>], iteration_bounds = array<i64: 2, 1, 1>, scalar_prefetch = 0 : i64, scratch_operands = 0 : i64, tpu.core_type = #tpu.core_type<tc>, window_params = [{transform_indices = @transform_0, window_bounds = array<i64: 1, 4, 256>}, {transform_indices = @transform_1, window_bounds = array<i64: 8, 4>}, {transform_indices = @transform_2, window_bounds = array<i64: 8, 1>}, {transform_indices = @transform_3, window_bounds = array<i64: 1, 8, 256>}]} {
    %c0 = arith.constant 0 : index
    %c0_0 = arith.constant 0 : index
    %0 = vector.load %arg4[%c0, %c0_0] : memref<8x4xbf16, #tpu.memory_space<vmem>>, vector<8x4xbf16>
    %c0_1 = arith.constant 0 : index
    %c0_2 = arith.constant 0 : index
    %c0_3 = arith.constant 0 : index
    %1 = vector.load %arg3[%c0_1, %c0_2, %c0_3] : memref<1x4x256xbf16, #tpu.memory_space<vmem>>, vector<1x4x256xbf16>
    %2 = vector.shape_cast %1 : vector<1x4x256xbf16> to vector<4x256xbf16>
    %cst = arith.constant dense<0.000000e+00> : vector<8x256xf32>
    %3 = tpu.matmul %0, %2, %cst {dimension_numbers = #tpu.dot_dimension_numbers<[1], [0], [0], [1], [0, 0, 1, 1], [], []>} : vector<8x4xbf16>, vector<4x256xbf16>, vector<8x256xf32> -> vector<8x256xf32>
    %c0_4 = arith.constant 0 : index
    %c0_5 = arith.constant 0 : index
    %4 = vector.load %arg5[%c0_4, %c0_5] : memref<8x1xf32, #tpu.memory_space<vmem>>, vector<8x1xf32>
    %5 = vector.broadcast %4 : vector<8x1xf32> to vector<8x256xf32>
    %6 = arith.addf %3, %5 : vector<8x256xf32>
    %cst_6 = arith.constant 0.000000e+00 : f32
    %7 = vector.broadcast %cst_6 : f32 to vector<8x256xf32>
    %8 = arith.maximumf %6, %7 : vector<8x256xf32>
    %c0_7 = arith.constant 0 : index
    %c0_8 = arith.constant 0 : index
    %c0_9 = arith.constant 0 : index
    %9 = vector.load %arg6[%c0_7, %c0_8, %c0_9] : memref<1x8x256xf32, #tpu.memory_space<vmem>>, vector<1x8x256xf32>
    %10 = vector.shape_cast %9 : vector<1x8x256xf32> to vector<8x256xf32>
    %11 = vector.shape_cast %8 : vector<8x256xf32> to vector<1x8x256xf32>
    tpu.vector_store %arg6[%c0_7, %c0_8, %c0_9], %11 {strides = array<i32>} : memref<1x8x256xf32, #tpu.memory_space<vmem>>, vector<1x8x256xf32>,
    return
  }
  func.func @transform_0(%arg0: i32, %arg1: i32, %arg2: i32) -> (i32, i32, i32) {
    %c0_i32 = arith.constant 0 : i32
    %c0_i32_0 = arith.constant 0 : i32
    return %arg0, %c0_i32, %arg1 : i32, i32, i32
  }
  func.func @transform_1(%arg0: i32, %arg1: i32, %arg2: i32) -> (i32, i32) {
    %c0_i32 = arith.constant 0 : i32
    %c0_i32_0 = arith.constant 0 : i32
    return %arg2, %c0_i32 : i32, i32
  }
  func.func @transform_2(%arg0: i32, %arg1: i32, %arg2: i32) -> (i32, i32) {
    %c0_i32 = arith.constant 0 : i32
    %c0_i32_0 = arith.constant 0 : i32
    return %arg2, %c0_i32 : i32, i32
  }
  func.func @transform_3(%arg0: i32, %arg1: i32, %arg2: i32) -> (i32, i32, i32) {
    %c0_i32 = arith.constant 0 : i32
    return %arg0, %arg2, %arg1 : i32, i32, i32
  }
}

</mosaic_0001>

<bundles_post_ra>
// kernel: tpu_custom_call.1
= control target key start
LH: loop header
LB: loop body
LE: loop exit
PB: predicated region body
PF: predicated region fallthrough
CT: control target
= control target key end

     0   :  { %8 = vsyncpa [#allocation3], 0  ;;  %s744_s0 = inlined_call_operand.vmem [shape: bf16[2,4,256], index: 0, kind: input, shape index: {}]   ;;  %s745_s1 = inlined_call_operand.vmem [shape: bf16[8,4], index: 1, kind: input, shape index: {}]   ;;  %s746_s2 = inlined_call_operand.vmem [shape: f32[8,1], index: 2, kind: input, shape index: {}]   ;;  %s747_s3 = inlined_call_operand.hbm [shape: f32[2,8,256], index: 3, kind: output, shape index: {}]  }
   0x1   :  { %10 = vsyncpa [#allocation3 + $0x1], 0  ;;  %s626_s12 = smov 0   ;;  %s628_s13 = smov 0  }
   0x2   :  { %s630_s14 = smov 0   ;;  %s632_s15 = smov 0  }
   0x3   :  { %s634_s16 = smov 0   ;;  %s636_s17 = smov 0  }
   0x4 LB: > { %s447_s18 = sadd.s32 4294967295, %s602_s17   ;;  %s448_s19 = sadd.s32 4294967294, %s602_s17   ;;  %s602_s17 = sphi %s636_s17, %s16_s17   ;;  %s598_s16 = sphi %s634_s16, %s754_s16   ;;  %s594_s15 = sphi %s632_s15, %s753_s15   ;;  %s590_s14 = sphi %s630_s14, %s752_s14   ;;  %s586_s13 = sphi %s628_s13, %s751_s13   ;;  %s582_s12 = sphi %s626_s12, %s750_s12  }
   0x5   : > { %s35_s20 = sadd.s32 1, %s598_s16  ;;  %s126_s21 = sadd.s32 1, %s590_s14 }
   0x6   : > { %p37_p0 = scmp.ge.s32.totalorder %s35_s20, 2  ;;  %p136_p1 = scmp.ne.s32.totalorder %s590_s14, %s586_s13 }
   0x7   : > { %p137_p2 = scmp.eq.s32.totalorder %s447_s18, 1  ;;  %p142_p3 = scmp.ne.s32.totalorder %s586_s13, %s582_s12 }
   0x8   : > { %s756_s20 = smov (%p37_p0, %s35_s20), 0  ;;  %p143_p5 = scmp.eq.s32.totalorder %s448_s19, 1 }
   0x9   : > { %p666_p4 = por %p137_p2, %p136_p1  ;;  %s119_s23 = ssub.s32 %s598_s16, %s756_s20 }
   0xa   : > { %p453_p6 = scmp.ge.s32.totalorder %s602_s17, 1  ;;  %p124_p7 = scmp.eq.s32.totalorder %s119_s23, 0 }
   0xb   : > { %p673_p8 = por %p143_p5, %p142_p3  ;;  %p188_p9 = scmp.lt.s32.totalorder %s602_s17, 3 }
   0xc   : > { %s679_s25 = scalar_select %p124_p7, %s590_s14, %s126_s21  }
   0xd   : > { %p189_p10 = pnand %p453_p6, %p188_p9 }
   0xe   : > { %p225_p11 = scmp.lt.s32.totalorder (!%p189_p10), %s594_s15, 1  ;;  %v604_v0 = vmov (!%p189_p10), 0   ;;  %v246_v1 = vld [vmem:[%s746_s2] sm:$0xff] (!%p189_p10)  ;;  %vm265_vm0 = vcmask (!%p189_p10), 1041408   ;;  %vm261_vm1 = vcmask (!%p189_p10), 31744   ;;  %s221_s8 = sand.u32 (!%p189_p10), 1, %s586_s13  }
   0xf   : > { %192 = sbr.rel (%p189_p10) target bundleno = 264 (0x108), region = 32  ;;  %304 = vmatprep.mubr.bf16.mxu0 (!%p189_p10), %v604_v0  ;;  %523 = vset.pattern.permute.xlu0 (!%p189_p10), %v604_v0  ;;  %v244_v5 = vld [vmem:[%s745_s1] sm:$0xf] (!%p189_p10)  ;;  %s454_s9 = sshll.u32 (!%p189_p10), %s221_s8, 4 }
  0x10   : > { %249 = vperm.xlu0 (!%p189_p10), %523, %v246_v1   ;;  %s466_s10 = sshll.u32 (!%p189_p10), %s594_s15, 8  ;;  %s223_s11 = scalar_lea.vmem (!%p189_p10), [#allocation2], %s454_s9 }
  0x11   : > { %s336_s18 = sshll.u32 (!%p189_p10), %s223_s11, 4  ;;  %s697_s23 = scalar_lea.hbm (!%p189_p10), %s747_s3, %s466_s10  ;;  %s699_s18 = int_to_ptr.vmem [resolvable:$true] %s336_s18 }
  0x12   : > { %s524_s26 = scalar_lea.vmem (!%p189_p10), %s699_s18, 256  ;;  %s605_s27 = smov (!%p189_p10), [#allocation2]  }
  0x13   : > { %p525_p12 = scmp.ne.s32.totalorder (!%p189_p10), %s699_s18, %s524_s26 }
  0x15   : > { %p526_p13 = pnand (!%p189_p10), %p525_p12, %p666_p4 }
  0x16   : > { %s226_s28 = scalar_select %p225_p11, %s594_s15, 1 }
  0x17   : > { %s318_s15 = scalar_lea.sflag [#allocation3], %s221_s8  ;;  %p527_p0 = pneg %p526_p13 }
  0x18   : > { %s465_s29 = sshll.u32 %s226_s28, 2  ;;  %s528_s28 = sshll.u32 %s605_s27, 4  ;;  %s529_s28 = int_to_ptr.vmem [resolvable:$false] %s528_s28 }
  0x19   : > { %s232_s5 = scalar_lea.vmem %s744_s0, %s465_s29  ;;  %s530_s29 = scalar_lea.vmem %s529_s28, 512 }
  0x1a   : > { %v457_v2 = vld.sshfl [vmem:[%s232_s5] sm:$0x33 pattern:$0x76325410]  ;;  %p531_p1 = scmp.lt.s32.totalorder %s699_s18, %s529_s28  ;;  %p532_p2 = scmp.lt.s32.totalorder %s530_s29, %s524_s26 }
  0x1b   : > { %v260_v3 = vcombine.high %v457_v2, %v457_v2  ;;  %v267_v4 = vsel %vm265_vm0, %v457_v2, 0 }
  0x1c   : > { %p533_p3 = por %p532_p2, %p531_p1 }
  0x1d   : > { %458 = vmatprep.subr.msk.bf16.mxu0 %vm265_vm0, %v260_v3 }
  0x1e   : > { %273 = vmatpush1.bf16.msra.mxu0 %v267_v4  ;;  %p534_p5 = pnand %p533_p3, %p527_p0 }
  0x21   : > { %459 = vmatmul.mubr.msk.bf16.vlgmr.msra.gmra.mrb[0].mxu0 %vm261_vm1, %v244_v5 }
  0x8f   : > { %v250_v6 = vpop.permute.xlu0 %249 }
  0xf4   : > { %v306_v7 = vpop.f32.mrb[0].mxu0 }
  0xf5   : > { %v307_v8 = vadd.f32 %v306_v7, %v250_v6  ;;  %v308_v9 = vpop.f32.mrb[1].mxu0 }
  0xf6   : > { %v309_v10 = vadd.f32 %v308_v9, %v250_v6  ;;  %v310_v11 = vpop.f32.mrb[2].mxu0 }
  0xf7   : > { %v313_v12 = vmax.f32 %v307_v8, 0.0  ;;  %v311_v13 = vpop.f32.mrb[3].mxu0 }
  0xf8   : > { %v314_v14 = vmax.f32 %v309_v10, 0.0 }
  0xf9   : > { %315 = vst [vmem:[%s223_s11] sm:$0xff] %v313_v12 }
  0xfa   : > { %316 = vst [vmem:[%s223_s11 + $0x8] sm:$0xff] %v314_v14 }
  0xfb   : > { %537 = shalt.err (!%p534_p5)
}
  0xfc   : > { %s538_s30 = scalar_lea.hbm %s697_s23, 256  ;;  %s542_s6 = scalar_lea.hbm %s747_s3, 512 }
  0xfd   : > { %p539_p6 = scmp.ne.s32.totalorder %s697_s23, %s538_s30  ;;  %p543_p10 = scmp.lt.u32.totalorder %s697_s23, %s747_s3 }
  0xfe   : > { %p544_p11 = scmp.lt.u32.totalorder %s542_s6, %s538_s30  ;;  %p546_p13 = scmp.lt.u32.totalorder %s538_s30, %s697_s23 }
  0xff   : > { %p540_p7 = pnand %p539_p6, %p666_p4 }
 0x100   : > { %p545_p12 = por %p544_p11, %p543_p10 }
 0x101   : > { %p541_p9 = pneg %p540_p7 }
 0x102   : > { %p547_p0 = por %p546_p13, %p545_p12 }
 0x104   : > { %p548_p1 = pnand %p547_p0, %p541_p9 }
 0x106   : > { %551 = shalt.err (!%p548_p1)
}
 0x107   : > { %467 = dma.vmem_to_hbm [thread:$0]  (%p666_p4), %s699_s18, 256, %s697_s23, %s318_s15  }
 0x108 PF: > { %p473_p2 = scmp.ge.s32.totalorder %s602_s17, 2  ;;  %s348_s9 = sand.u32 1, %s582_s12  }
 0x109   : > { %s349_s10 = scalar_lea.sflag [#allocation3], %s348_s9 }
 0x10a   : > { %p470_p3 = pnand %p473_p2, %p673_p8 }
 0x10c   : > { %577 = dma.done.wait (!%p470_p3), %s349_s10, 256  }
 0x10d   : > { %579 = vsyncadd (!%p470_p3), %s349_s10, 4294967040  ;;  %s16_s17 = sadd.s32 1, %s602_s17   ;;  %s750_s12 = smov %s586_s13 }
 0x10e   : > { %p13_p5 = scmp.ge.s32.totalorder %s16_s17, 4   ;;  %s751_s13 = smov %s590_s14 }
 0x10f   : > { %s752_s14 = smov %s679_s25  ;;  %s753_s15 = smov %s598_s16 }
 0x110   : > { %s754_s16 = smov %s756_s20  ;;  %15 = sbr.rel (!%p13_p5) target bundleno = 4 (0x4), region = 73 }
 0x117   :  { %354 = vsyncpa [#allocation3], 1 }
 0x118   :  { %356 = vsyncpa [#allocation3 + $0x1], 1 }

</bundles_post_ra>
